<compile_context>
chip_gen: v5e
topology: v5e:2x2
jax: 0.10.0
libtpu: 0.0.40
codegen_flags: <defaults>
</compile_context>

<pallas_src>
import functools

import jax
import jax.numpy as jnp
from jax.experimental import pallas as pl
from jax.experimental.pallas import tpu as pltpu

LANE = 128
DEFAULT_TILE = 512          # tm == tk; multiple of 256 for the v6e/v7x MXU
FUSED_MAX_NODES = 2048      # A(bf16)+activations ~11 MiB -> resident on all gens


def _round_up(v, m):
    return ((v + m - 1) // m) * m


# ----------------------------------------------------------------------------
# Fused single-call kernel (small/medium graphs): everything VMEM-resident.
#   out = A @ (relu(A @ XW1 + b1) @ W2) + b2
# ----------------------------------------------------------------------------
def _fused_gcn_kernel(a_ref, xw1_ref, b1_ref, w2_ref, b2_ref, o_ref):
    a = a_ref[...]                                                  # (n, n) bf16
    h1 = jnp.dot(a, xw1_ref[...], preferred_element_type=jnp.float32)
    h1 = jnp.maximum(h1 + b1_ref[...], 0.0)                         # f32
    # TODO(synk): training-mode dropout would mask h1 here via pltpu.prng_*.
    hw2 = jnp.dot(h1.astype(jnp.bfloat16), w2_ref[...],
                  preferred_element_type=jnp.float32)               # (n, 128)
    out = jnp.dot(a, hw2.astype(jnp.bfloat16),
                  preferred_element_type=jnp.float32) + b2_ref[...]
    o_ref[...] = out.astype(o_ref.dtype)


def _fused_gcn(a_bf16, xw1_bf16, b1, w2_bf16, b2):
    n_pad = a_bf16.shape[0]
    c2 = w2_bf16.shape[1]
    return pl.pallas_call(
        _fused_gcn_kernel,
        out_shape=jax.ShapeDtypeStruct((n_pad, c2), jnp.float32),
        compiler_params=pltpu.CompilerParams(
            vmem_limit_bytes=48 * 1024 * 1024),
    )(a_bf16, xw1_bf16, b1, w2_bf16, b2)


# ----------------------------------------------------------------------------
# Tiled kernels (large graphs)
# ----------------------------------------------------------------------------
def _layer1_kernel(a_ref, xw1_ref, b1_ref, w2_ref, o_ref, acc_ref, *, tk):
    """acc (+)= A_tile @ XW1[k-slice]; last k: o = relu(acc+b1) @ W2 (bf16)."""
    k = pl.program_id(1)
    start = pl.multiple_of(k * tk, tk)
    partial = jnp.dot(a_ref[...], xw1_ref[pl.ds(start, tk), :],
                      preferred_element_type=jnp.float32)

    @pl.when(k == 0)
    def _init():
        acc_ref[...] = partial

    @pl.when(k != 0)
    def _accum():
        acc_ref[...] += partial

    @pl.when(k == pl.num_programs(1) - 1)
    def _finalize():
        h1 = jnp.maximum(acc_ref[...] + b1_ref[...], 0.0).astype(jnp.bfloat16)
        # Fused feature matmul: lane-dense (tm, 128) bf16 output on the MXU.
        o_ref[...] = jnp.dot(
            h1, w2_ref[...], preferred_element_type=jnp.float32
        ).astype(o_ref.dtype)


def _layer2_kernel(a_ref, hw2_ref, b2_ref, o_ref, acc_ref, *, tk):
    """acc (+)= A_tile @ HW2[k-slice]; last k: o = acc + b2."""
    k = pl.program_id(1)
    start = pl.multiple_of(k * tk, tk)
    partial = jnp.dot(a_ref[...], hw2_ref[pl.ds(start, tk), :],
                      preferred_element_type=jnp.float32)

    @pl.when(k == 0)
    def _init():
        acc_ref[...] = partial

    @pl.when(k != 0)
    def _accum():
        acc_ref[...] += partial

    @pl.when(k == pl.num_programs(1) - 1)
    def _finalize():
        o_ref[...] = (acc_ref[...] + b2_ref[...]).astype(o_ref.dtype)


def _tiled_layer1(a_bf16, xw1_bf16, b1, w2_bf16, *, tile):
    n_pad = a_bf16.shape[0]
    c1 = xw1_bf16.shape[1]
    c2 = w2_bf16.shape[1]
    grid = (n_pad // tile, n_pad // tile)
    flops = 2 * n_pad * n_pad * c1 + 2 * n_pad * c1 * c2
    bytes_accessed = (n_pad * n_pad * 2       # A (bf16), streamed once
                      + n_pad * c1 * 2        # XW1 resident, loaded once
                      + c1 * c2 * 2 + c1 * 4  # W2 + b1
                      + n_pad * c2 * 2)       # bf16 HW2 output
    return pl.pallas_call(
        functools.partial(_layer1_kernel, tk=tile),
        out_shape=jax.ShapeDtypeStruct((n_pad, c2), jnp.bfloat16),
        grid_spec=pltpu.PrefetchScalarGridSpec(
            num_scalar_prefetch=0,
            grid=grid,
            in_specs=[
                pl.BlockSpec((tile, tile), lambda i, k: (i, k)),  # A tile
                pl.BlockSpec((n_pad, c1), lambda i, k: (0, 0)),   # XW1 resident
                pl.BlockSpec((1, c1), lambda i, k: (0, 0)),       # b1
                pl.BlockSpec((c1, c2), lambda i, k: (0, 0)),      # W2 resident
            ],
            out_specs=pl.BlockSpec((tile, c2), lambda i, k: (i, 0)),
            scratch_shapes=[pltpu.VMEM((tile, c1), jnp.float32)],
        ),
        compiler_params=pltpu.CompilerParams(
            dimension_semantics=("parallel", "arbitrary"),
            vmem_limit_bytes=48 * 1024 * 1024),
        cost_estimate=pl.CostEstimate(
            flops=flops, transcendentals=0, bytes_accessed=bytes_accessed),
    )(a_bf16, xw1_bf16, b1, w2_bf16)


def _tiled_layer2(a_bf16, hw2_bf16, b2, *, tile):
    n_pad = a_bf16.shape[0]
    c2 = hw2_bf16.shape[1]
    grid = (n_pad // tile, n_pad // tile)
    flops = 2 * n_pad * n_pad * c2
    bytes_accessed = (n_pad * n_pad * 2       # A (bf16), streamed once
                      + n_pad * c2 * 2        # HW2 resident, loaded once
                      + n_pad * c2 * 4        # f32 output
                      + c2 * 4)               # b2
    return pl.pallas_call(
        functools.partial(_layer2_kernel, tk=tile),
        out_shape=jax.ShapeDtypeStruct((n_pad, c2), jnp.float32),
        grid_spec=pltpu.PrefetchScalarGridSpec(
            num_scalar_prefetch=0,
            grid=grid,
            in_specs=[
                pl.BlockSpec((tile, tile), lambda i, k: (i, k)),  # A tile
                pl.BlockSpec((n_pad, c2), lambda i, k: (0, 0)),   # HW2 resident
                pl.BlockSpec((1, c2), lambda i, k: (0, 0)),       # b2
            ],
            out_specs=pl.BlockSpec((tile, c2), lambda i, k: (i, 0)),
            scratch_shapes=[pltpu.VMEM((tile, c2), jnp.float32)],
        ),
        compiler_params=pltpu.CompilerParams(
            dimension_semantics=("parallel", "arbitrary"),
            vmem_limit_bytes=48 * 1024 * 1024),
        cost_estimate=pl.CostEstimate(
            flops=flops, transcendentals=0, bytes_accessed=bytes_accessed),
    )(a_bf16, hw2_bf16, b2)


# ----------------------------------------------------------------------------
# ConformalGCN forward (eval mode, regression task)
# ----------------------------------------------------------------------------
def conformal_gcn_forward(x, adj_hat, w1, b1, w2, b2, *,
                          tile=DEFAULT_TILE, fused_max_nodes=FUSED_MAX_NODES):
    n = x.shape[0]
    final_dim = w2.shape[1]

    # Lane-dense outputs: zero-pad W2 / b2 to a multiple of 128 columns.
    c2 = _round_up(final_dim, LANE)
    w2_p = jnp.pad(w2, ((0, 0), (0, c2 - final_dim))).astype(jnp.bfloat16)
    b2_p = jnp.pad(b2, ((0, 0), (0, c2 - final_dim)))

    use_fused = n <= fused_max_nodes
    if use_fused:
        n_pad = _round_up(n, LANE)      # small graphs: don't pad up to 512 tiles
    else:
        assert tile % 256 == 0, "tile must be a multiple of 256"
        n_pad = _round_up(n, tile)      # tm == tk == tile -> grid divides evenly

    # Zero-padded A_hat rows/cols leave real rows untouched; padded output rows
    # (which pick up relu(b1)@W2 garbage) are sliced off at the end.
    x_p = jnp.pad(x, ((0, n_pad - n), (0, 0)))
    a_bf16 = jnp.pad(adj_hat, ((0, n_pad - n), (0, n_pad - n))).astype(jnp.bfloat16)

    # First feature matmul is O(N * in * hidden) -> negligible; plain XLA.
    xw1 = jnp.dot(x_p, w1).astype(jnp.bfloat16)

    # F.dropout(p=0.5, training=False) -> identity.
    # TODO(synk): add pltpu.prng_seed/prng_random_bits masking for training mode.

    if use_fused:
        out = _fused_gcn(a_bf16, xw1, b1, w2_p, b2_p)
    else:
        hw2 = _tiled_layer1(a_bf16, xw1, b1, w2_p, tile=tile)
        out = _tiled_layer2(a_bf16, hw2, b2_p, tile=tile)

    # Regression head: cat(x[:, :d/3], x[:, d/3:2d/3], x[:, 2d/3:]) == identity.
    return out[:n, :final_dim]


# ----------------------------------------------------------------------------
# Plain-JAX glue + reference
# ----------------------------------------------------------------------------
def normalized_adjacency(edge_index, num_nodes):
    """Dense D^{-1/2}(A + I)D^{-1/2}, matching GCNConv's default normalization."""
    # TODO(synk): duplicate edges collapse to weight 1 here; PyG add-aggregation
    # would count them twice (irrelevant for the simple-graph demo below).
    src, dst = edge_index[0], edge_index[1]
    a = jnp.zeros((num_nodes, num_nodes), jnp.float32).at[dst, src].set(1.0)
    a = a + jnp.eye(num_nodes, dtype=jnp.float32)
    deg = a.sum(axis=1)
    dinv = jnp.where(deg > 0, 1.0 / jnp.sqrt(deg), 0.0)
    return dinv[:, None] * a * dinv[None, :]


def glorot(key, shape):
    fan_in, fan_out = shape
    lim = jnp.sqrt(6.0 / (fan_in + fan_out))
    return jax.random.uniform(key, shape, jnp.float32, -lim, lim)


def reference_forward(x, adj_hat, w1, b1, w2, b2):
    hp = jax.lax.Precision.HIGHEST
    h1 = jnp.maximum(
        jnp.dot(adj_hat, jnp.dot(x, w1, precision=hp), precision=hp) + b1, 0.0
    )
    return jnp.dot(adj_hat, jnp.dot(h1, w2, precision=hp), precision=hp) + b2


if __name__ == "__main__":
    # ConformalGCN(in_channels=4, hidden_channels=32, out_channels=3,
    #              task='regression') -> final_dim = 3 * 3 = 9
    in_channels, hidden_channels, out_channels = 4, 32, 3
    final_dim = out_channels * 3

    key = jax.random.PRNGKey(0)
    kx, kw1, kb1, kw2, kb2, kx2 = jax.random.split(key, 6)

    w1 = glorot(kw1, (in_channels, hidden_channels))
    b1 = 0.01 * jax.random.normal(kb1, (1, hidden_channels), jnp.float32)
    w2 = glorot(kw2, (hidden_channels, final_dim))
    b2 = 0.01 * jax.random.normal(kb2, (1, final_dim), jnp.float32)

    def make_graph(k, num_nodes):
        xg = jax.random.normal(k, (num_nodes, in_channels), jnp.float32)
        src = jnp.arange(num_nodes, dtype=jnp.int32)
        dst = (src + 1) % num_nodes
        edge_index = jnp.stack(
            [jnp.concatenate([src, dst]), jnp.concatenate([dst, src])], axis=0)
        return xg, normalized_adjacency(edge_index, num_nodes)

    # 1) Small graph (200 nodes -> pads to 256): fully-resident fused kernel.
    x_s, adj_s = make_graph(kx, 200)
    fwd = jax.jit(conformal_gcn_forward)
    out_s = jax.block_until_ready(fwd(x_s, adj_s, w1, b1, w2, b2))
    ref_s = reference_forward(x_s, adj_s, w1, b1, w2, b2)
    assert out_s.shape == (200, final_dim)
    # bf16 MXU operands with f32 accumulation -> ~1e-2-scale error vs f32 ref.
    assert jnp.allclose(out_s, ref_s, atol=5e-2, rtol=5e-2), float(
        jnp.max(jnp.abs(out_s - ref_s)))

    # 2) Larger graph forced onto the tiled two-kernel path (1000 -> 1024,
    #    512x512 A tiles, grid (2, 2), resident activations, fused W2 epilogue).
    x_l, adj_l = make_graph(kx2, 1000)
    fwd_tiled = jax.jit(
        functools.partial(conformal_gcn_forward, tile=512, fused_max_nodes=0))
    out_l = jax.block_until_ready(fwd_tiled(x_l, adj_l, w1, b1, w2, b2))
    ref_l = reference_forward(x_l, adj_l, w1, b1, w2, b2)
    assert out_l.shape == (1000, final_dim)
    assert jnp.allclose(out_l, ref_l, atol=5e-2, rtol=5e-2), float(
        jnp.max(jnp.abs(out_l - ref_l)))

    print("KERNEL_OK")
</pallas_src>

<mosaic_0001>
module attributes {stable_mosaic.version = 11 : i64} {
  func.func @_fused_gcn_kernel(%arg0: memref<256x256xbf16, #tpu.memory_space<vmem>>, %arg1: memref<256x32xbf16, #tpu.memory_space<vmem>>, %arg2: memref<1x32xf32, #tpu.memory_space<vmem>>, %arg3: memref<32x128xbf16, #tpu.memory_space<vmem>>, %arg4: memref<1x128xf32, #tpu.memory_space<vmem>>, %arg5: memref<256x128xf32, #tpu.memory_space<vmem>>) attributes {dimension_semantics = [], scalar_prefetch = 0 : i64, scratch_operands = 0 : i64, tpu.core_type = #tpu.core_type<tc>} {
    %c0 = arith.constant 0 : index
    %c0_0 = arith.constant 0 : index
    %0 = vector.load %arg0[%c0, %c0_0] : memref<256x256xbf16, #tpu.memory_space<vmem>>, vector<256x256xbf16>
    %c0_1 = arith.constant 0 : index
    %c0_2 = arith.constant 0 : index
    %1 = vector.load %arg1[%c0_1, %c0_2] : memref<256x32xbf16, #tpu.memory_space<vmem>>, vector<256x32xbf16>
    %cst = arith.constant dense<0.000000e+00> : vector<256x32xf32>
    %2 = tpu.matmul %0, %1, %cst {dimension_numbers = #tpu.dot_dimension_numbers<[1], [0], [0], [1], [0, 0, 1, 1], [], []>} : vector<256x256xbf16>, vector<256x32xbf16>, vector<256x32xf32> -> vector<256x32xf32>
    %c0_3 = arith.constant 0 : index
    %c0_4 = arith.constant 0 : index
    %3 = vector.load %arg2[%c0_3, %c0_4] : memref<1x32xf32, #tpu.memory_space<vmem>>, vector<1x32xf32>
    %4 = vector.broadcast %3 : vector<1x32xf32> to vector<256x32xf32>
    %5 = arith.addf %2, %4 : vector<256x32xf32>
    %cst_5 = arith.constant 0.000000e+00 : f32
    %6 = vector.broadcast %cst_5 : f32 to vector<256x32xf32>
    %7 = arith.maximumf %5, %6 : vector<256x32xf32>
    %8 = arith.truncf %7 : vector<256x32xf32> to vector<256x32xbf16>
    %c0_6 = arith.constant 0 : index
    %c0_7 = arith.constant 0 : index
    %9 = vector.load %arg3[%c0_6, %c0_7] : memref<32x128xbf16, #tpu.memory_space<vmem>>, vector<32x128xbf16>
    %cst_8 = arith.constant dense<0.000000e+00> : vector<256x128xf32>
    %10 = tpu.matmul %8, %9, %cst_8 {dimension_numbers = #tpu.dot_dimension_numbers<[1], [0], [0], [1], [0, 0, 1, 1], [], []>} : vector<256x32xbf16>, vector<32x128xbf16>, vector<256x128xf32> -> vector<256x128xf32>
    %11 = arith.truncf %10 : vector<256x128xf32> to vector<256x128xbf16>
    %cst_9 = arith.constant dense<0.000000e+00> : vector<256x128xf32>
    %12 = tpu.matmul %0, %11, %cst_9 {dimension_numbers = #tpu.dot_dimension_numbers<[1], [0], [0], [1], [0, 0, 1, 1], [], []>} : vector<256x256xbf16>, vector<256x128xbf16>, vector<256x128xf32> -> vector<256x128xf32>
    %c0_10 = arith.constant 0 : index
    %c0_11 = arith.constant 0 : index
    %13 = vector.load %arg4[%c0_10, %c0_11] : memref<1x128xf32, #tpu.memory_space<vmem>>, vector<1x128xf32>
    %14 = vector.broadcast %13 : vector<1x128xf32> to vector<256x128xf32>
    %15 = arith.addf %12, %14 : vector<256x128xf32>
    %c0_12 = arith.constant 0 : index
    %c0_13 = arith.constant 0 : index
    %16 = vector.load %arg5[%c0_12, %c0_13] : memref<256x128xf32, #tpu.memory_space<vmem>>, vector<256x128xf32>
    tpu.vector_store %arg5[%c0_12, %c0_13], %15 {strides = array<i32>} : memref<256x128xf32, #tpu.memory_space<vmem>>, vector<256x128xf32>,
    return
  }
}

</mosaic_0001>

<bundles_post_ra>
// kernel: conformal_gcn_forward.1
= control target key start
LH: loop header
LB: loop body
LE: loop exit
PB: predicated region body
PF: predicated region fallthrough
CT: control target
= control target key end

     0   :  { %vm587_vm0 = vcmask 261120   ;;  %s1877_s1 = inlined_call_operand.vmem [shape: bf16[256,32], index: 1, kind: input, shape index: {}]   ;;  %s1878_s2 = inlined_call_operand.vmem [shape: f32[1,32], index: 2, kind: input, shape index: {}]   ;;  %s1879_s0 = inlined_call_operand.vmem [shape: bf16[256,256], index: 0, kind: input, shape index: {}]   ;;  %s1880_s3 = inlined_call_operand.vmem [shape: bf16[32,128], index: 3, kind: input, shape index: {}]   ;;  %s1881_s4 = inlined_call_operand.vmem [shape: f32[1,128], index: 4, kind: input, shape index: {}]   ;;  %s1882_s5 = inlined_call_operand.vmem [shape: f32[256,128], index: 5, kind: output, shape index: {}]  }
   0x1   :  { %v1214_v0 = vld [vmem:[%s1877_s1 + $0x38] sm:$0xff]  ;;  %v1213_v1 = vld [vmem:[%s1877_s1 + $0x30] sm:$0xff]  ;;  %v1212_v2 = vld [vmem:[%s1877_s1 + $0x28] sm:$0xff] }
   0x2   :  { %1225 = vmatpush.bf16.msra.mxu1 %v1214_v0  ;;  %345 = vmatpush.bf16.msra.mxu0 %v1214_v0  ;;  %v1211_v3 = vld [vmem:[%s1877_s1 + $0x20] sm:$0xff]  ;;  %v1210_v4 = vld [vmem:[%s1877_s1 + $0x18] sm:$0xff]  ;;  %v1209_v5 = vld [vmem:[%s1877_s1 + $0x10] sm:$0xff] }
   0x3   :  { %1226 = vmatpush.bf16.msra.mxu3 %v1214_v0  ;;  %v1208_v6 = vld [vmem:[%s1877_s1 + $0x8] sm:$0xff]  ;;  %v1207_v7 = vld [vmem:[%s1877_s1] sm:$0xff]  ;;  %v1222_v12 = vld [vmem:[%s1877_s1 + $0x78] sm:$0xff] }
   0x4   :  { %v1041_v8 = vld [vmem:[%s1879_s0 + $0xa0] sm:$0xf]  ;;  %v1196_v9 = vld [vmem:[%s1879_s0 + $0xa4] sm:$0xf0]  ;;  %v1221_v15 = vld [vmem:[%s1877_s1 + $0x70] sm:$0xff] }
   0x5   :  { %v961_v10 = vld [vmem:[%s1879_s0] sm:$0xf]  ;;  %v1176_v11 = vld [vmem:[%s1879_s0 + $0x4] sm:$0xf0]  ;;  %v1314_v13 = vor.u32 %v1196_v9, %v1041_v8  ;;  %v1049_v18 = vld [vmem:[%s1879_s0 + $0xb0] sm:$0xf] }
   0x6   :  { %1227 = vmatpush.bf16.msra.mxu1 %v1213_v1  ;;  %346 = vmatpush.bf16.msra.mxu0 %v1213_v1  ;;  %v1316_v14 = vor.u32 %v1176_v11, %v961_v10  ;;  %v1220_v16 = vld [vmem:[%s1877_s1 + $0x68] sm:$0xff]  ;;  %v1219_v17 = vld [vmem:[%s1877_s1 + $0x60] sm:$0xff]  ;;  %v1198_v19 = vld [vmem:[%s1879_s0 + $0xb4] sm:$0xf0] }
   0x7   :  { %1228 = vmatpush.bf16.msra.mxu3 %v1213_v1  ;;  %v969_v20 = vld [vmem:[%s1879_s0 + $0x10] sm:$0xf]  ;;  %v1178_v21 = vld [vmem:[%s1879_s0 + $0x14] sm:$0xf0]  ;;  %v1344_v23 = vor.u32 %v1198_v19, %v1049_v18  ;;  %v1216_v26 = vld [vmem:[%s1877_s1 + $0x48] sm:$0xff] }
   0x8   :  { %v1218_v22 = vld [vmem:[%s1877_s1 + $0x58] sm:$0xff]  ;;  %v1346_v24 = vor.u32 %v1178_v21, %v969_v20  ;;  %v1217_v25 = vld [vmem:[%s1877_s1 + $0x50] sm:$0xff]  ;;  %v1215_v27 = vld [vmem:[%s1877_s1 + $0x40] sm:$0xff] }
   0x9   :  { %v1175_v28 = vld [vmem:[%s1879_s0 + $0x4] sm:$0xf]  ;;  %v963_v29 = vld [vmem:[%s1879_s0 + $0x8] sm:$0xf0]  ;;  %v977_v30 = vld [vmem:[%s1879_s0 + $0x20] sm:$0xf] }
   0xa   :  { %1229 = vmatpush.bf16.msra.mxu1 %v1212_v2  ;;  %347 = vmatpush.bf16.msra.mxu0 %v1212_v2  ;;  %v1180_v31 = vld [vmem:[%s1879_s0 + $0x24] sm:$0xf0]  ;;  %v1371_v32 = vor.u32 %v1175_v28, %v963_v29  ;;  %v1177_v34 = vld [vmem:[%s1879_s0 + $0x14] sm:$0xf]  ;;  %v971_v35 = vld [vmem:[%s1879_s0 + $0x18] sm:$0xf0] }
   0xb   :  { %1230 = vmatpush.bf16.msra.mxu3 %v1212_v2  ;;  %v1373_v33 = vor.u32 %v1180_v31, %v977_v30  ;;  %v985_v36 = vld [vmem:[%s1879_s0 + $0x30] sm:$0xf]  ;;  %v1182_v37 = vld [vmem:[%s1879_s0 + $0x34] sm:$0xf0]  ;;  %v1389_v38 = vor.u32 %v1177_v34, %v971_v35  ;;  %v1179_v40 = vld [vmem:[%s1879_s0 + $0x24] sm:$0xf] }
   0xc   :  { %v1391_v39 = vor.u32 %v1182_v37, %v985_v36  ;;  %v979_v41 = vld [vmem:[%s1879_s0 + $0x28] sm:$0xf0]  ;;  %v993_v42 = vld [vmem:[%s1879_s0 + $0x40] sm:$0xf]  ;;  %v1184_v43 = vld [vmem:[%s1879_s0 + $0x44] sm:$0xf0] }
   0xd   :  { %v1407_v44 = vor.u32 %v1179_v40, %v979_v41  ;;  %v1409_v45 = vor.u32 %v1184_v43, %v993_v42  ;;  %v1181_v46 = vld [vmem:[%s1879_s0 + $0x34] sm:$0xf]  ;;  %v987_v47 = vld [vmem:[%s1879_s0 + $0x38] sm:$0xf0]  ;;  %v1001_v48 = vld [vmem:[%s1879_s0 + $0x50] sm:$0xf] }
   0xe   :  { %1231 = vmatpush.bf16.msra.mxu1 %v1211_v3  ;;  %348 = vmatpush.bf16.msra.mxu0 %v1211_v3  ;;  %v1186_v49 = vld [vmem:[%s1879_s0 + $0x54] sm:$0xf0]  ;;  %v1425_v50 = vor.u32 %v1181_v46, %v987_v47  ;;  %v1183_v52 = vld [vmem:[%s1879_s0 + $0x44] sm:$0xf]  ;;  %v995_v53 = vld [vmem:[%s1879_s0 + $0x48] sm:$0xf0] }
   0xf   :  { %1232 = vmatpush.bf16.msra.mxu3 %v1211_v3  ;;  %v1427_v51 = vor.u32 %v1186_v49, %v1001_v48  ;;  %v1009_v54 = vld [vmem:[%s1879_s0 + $0x60] sm:$0xf]  ;;  %v1188_v55 = vld [vmem:[%s1879_s0 + $0x64] sm:$0xf0]  ;;  %v1443_v56 = vor.u32 %v1183_v52, %v995_v53  ;;  %v1185_v58 = vld [vmem:[%s1879_s0 + $0x54] sm:$0xf] }
  0x10   :  { %v1445_v57 = vor.u32 %v1188_v55, %v1009_v54  ;;  %v1003_v59 = vld [vmem:[%s1879_s0 + $0x58] sm:$0xf0]  ;;  %v1017_v60 = vld [vmem:[%s1879_s0 + $0x70] sm:$0xf]  ;;  %v1190_v61 = vld [vmem:[%s1879_s0 + $0x74] sm:$0xf0] }
  0x11   :  { %v1461_v62 = vor.u32 %v1185_v58, %v1003_v59  ;;  %v1463_v63 = vor.u32 %v1190_v61, %v1017_v60  ;;  %v1187_v0 = vld [vmem:[%s1879_s0 + $0x64] sm:$0xf]  ;;  %v1011_v1 = vld [vmem:[%s1879_s0 + $0x68] sm:$0xf0]  ;;  %v1025_v2 = vld [vmem:[%s1879_s0 + $0x80] sm:$0xf] }
  0x12   :  { %1233 = vmatpush.bf16.msra.mxu1 %v1210_v4  ;;  %349 = vmatpush.bf16.msra.mxu0 %v1210_v4  ;;  %v1192_v3 = vld [vmem:[%s1879_s0 + $0x84] sm:$0xf0]  ;;  %v1223_v11 = vld [vmem:[%s1880_s3] sm:$0xff]  ;;  %v1193_v46 = vld [vmem:[%s1879_s0 + $0x94] sm:$0xf] }
  0x13   :  { %1234 = vmatpush.bf16.msra.mxu3 %v1210_v4  ;;  %v1479_v4 = vor.u32 %v1187_v0, %v1011_v1  ;;  %v1224_v8 = vld [vmem:[%s1880_s3 + $0x8] sm:$0xff]  ;;  %v1528_v31 = vld [vmem:[%s1878_s2] ss:$0 sm:$0xff]  ;;  %v1035_v47 = vld [vmem:[%s1879_s0 + $0x98] sm:$0xf0] }
  0x14   :  { %1241 = vmatpush.bf16.msra.mxu2 %v1224_v8  ;;  %v1540_v49 = vor.u32 %v1193_v46, %v1035_v47  ;;  %v1057_v54 = vld [vmem:[%s1879_s0 + $0xc0] sm:$0xf]  ;;  %v1200_v55 = vld [vmem:[%s1879_s0 + $0xc4] sm:$0xf0] }
  0x15   :  { %v1548_v58 = vor.u32 %v1200_v55, %v1057_v54 }
  0x16   :  { %1235 = vmatpush.bf16.msra.mxu1 %v1209_v5  ;;  %350 = vmatpush.bf16.msra.mxu0 %v1209_v5 }
  0x17   :  { %1236 = vmatpush.bf16.msra.mxu3 %v1209_v5  ;;  %v1481_v5 = vor.u32 %v1192_v3, %v1025_v2 }
  0x18   :  { %1242 = vmatpush.bf16.msra.mxu2 %v1223_v11 }
  0x1a   :  { %1237 = vmatpush.bf16.msra.mxu1 %v1208_v6  ;;  %351 = vmatpush.bf16.msra.mxu0 %v1208_v6 }
  0x1b   :  { %1238 = vmatpush.bf16.msra.mxu3 %v1208_v6 }
  0x1e   :  { %1239 = vmatpush.bf16.msra.mxu1 %v1207_v7  ;;  %352 = vmatpush.bf16.msra.mxu0 %v1207_v7 }
  0x1f   :  { %1240 = vmatpush.bf16.msra.mxu3 %v1207_v7 }
  0x21   :  { %403 = vmatmul.bf16.vlgmr.msra.gmra.mxu1 %v1314_v13  ;;  %353 = vmatmul.bf16.vlgmr.msra.gmra.mxu0 %v1316_v14 }
  0x22   :  { %434 = vmatpush.bf16.msrb.mxu1 %v1222_v12  ;;  %642 = vmatpush.bf16.msrb.mxu0 %v1224_v8  ;;  %v1189_v12 = vld [vmem:[%s1879_s0 + $0x74] sm:$0xf]  ;;  %v1195_v8 = vld [vmem:[%s1879_s0 + $0xa4] sm:$0xf] }
  0x23   :  { %413 = vmatmul.bf16.vlgmr.msra.gmra.mxu3 %v1548_v58 }
  0x26   :  { %435 = vmatpush.bf16.msrb.mxu1 %v1221_v15  ;;  %v1019_v15 = vld [vmem:[%s1879_s0 + $0x78] sm:$0xf0]  ;;  %643 = vmatpush.bf16.msrb.mxu0 %v1223_v11 }
  0x27   :  { %v1507_v18 = vor.u32 %v1189_v12, %v1019_v15 }
  0x2a   :  { %436 = vmatpush.bf16.msrb.mxu1 %v1220_v16  ;;  %v1033_v16 = vld [vmem:[%s1879_s0 + $0x90] sm:$0xf] }
  0x2e   :  { %437 = vmatpush.bf16.msrb.mxu1 %v1219_v17  ;;  %v1194_v17 = vld [vmem:[%s1879_s0 + $0x94] sm:$0xf0] }
  0x2f   :  { %v1509_v19 = vor.u32 %v1194_v17, %v1033_v16  ;;  %v1065_v17 = vld [vmem:[%s1879_s0 + $0xd0] sm:$0xf] }
  0x31   :  { %408 = vmatmul.bf16.gmra.mxu1 %v1344_v23  ;;  %358 = vmatmul.bf16.gmra.mxu0 %v1346_v24 }
  0x32   :  { %438 = vmatpush.bf16.msrb.mxu1 %v1218_v22 }
  0x36   :  { %439 = vmatpush.bf16.msrb.mxu1 %v1217_v25 }
  0x3a   :  { %440 = vmatpush.bf16.msrb.mxu1 %v1216_v26  ;;  %v1191_v26 = vld [vmem:[%s1879_s0 + $0x84] sm:$0xf] }
  0x3e   :  { %441 = vmatpush.bf16.msrb.mxu1 %v1215_v27  ;;  %v1027_v27 = vld [vmem:[%s1879_s0 + $0x88] sm:$0xf0] }
  0x3f   :  { %v1523_v28 = vor.u32 %v1191_v26, %v1027_v27 }
  0x41   :  { %442 = vmatmul.bf16.vlgmr.msrb.gmra.mxu1 %v1371_v32  ;;  %363 = vmatmul.bf16.gmra.mxu0 %v1373_v33 }
  0x51   :  { %447 = vmatmul.bf16.gmra.mxu1 %v1389_v38  ;;  %368 = vmatmul.bf16.gmra.mxu0 %v1391_v39 }
  0x61   :  { %452 = vmatmul.bf16.gmra.mxu1 %v1407_v44  ;;  %373 = vmatmul.bf16.gmra.mxu0 %v1409_v45 }
  0x71   :  { %457 = vmatmul.bf16.gmra.mxu1 %v1425_v50  ;;  %378 = vmatmul.bf16.gmra.mxu0 %v1427_v51 }
  0x81   :  { %462 = vmatmul.bf16.gmra.mxu1 %v1443_v56  ;;  %383 = vmatmul.bf16.gmra.mxu0 %v1445_v57 }
  0x91   :  { %467 = vmatmul.bf16.gmra.mxu1 %v1461_v62  ;;  %388 = vmatmul.bf16.gmra.mxu0 %v1463_v63 }
  0x9e   :  { %v1483_v6 = vpop.f32.mrf.mxu1  ;;  %v354_v7 = vpop.f32.mrf.mxu0 }
  0x9f   :  { %v355_v34 = vadd.f32 %v1528_v31, %v354_v7 }
  0xa1   :  { %472 = vmatmul.bf16.gmra.mxu1 %v1479_v4  ;;  %393 = vmatmul.bf16.gmra.mxu0 %v1481_v5 }
  0xa6   :  { %v1490_v9 = vpop.f32.mrf.mxu1  ;;  %v356_v10 = vpop.f32.mrf.mxu0 }
  0xa7   :  { %v357_v35 = vadd.f32 %v1528_v31, %v356_v10  ;;  %v1043_v10 = vld [vmem:[%s1879_s0 + $0xa8] sm:$0xf0] }
  0xa8   :  { %v1561_v12 = vor.u32 %v1195_v8, %v1043_v10  ;;  %v1199_v8 = vld [vmem:[%s1879_s0 + $0xc4] sm:$0xf] }
  0xae   :  { %v1511_v20 = vpop.f32.mrf.mxu1  ;;  %v359_v21 = vpop.f32.mrf.mxu0 }
  0xaf   :  { %v360_v59 = vadd.f32 %v1528_v31, %v359_v21  ;;  %v1202_v21 = vld [vmem:[%s1879_s0 + $0xd4] sm:$0xf0] }
  0xb1   :  { %477 = vmatmul.bf16.gmra.mxu1 %v1507_v18  ;;  %398 = vmatmul.bf16.gmra.mxu0 %v1509_v19 }
  0xb6   :  { %v1515_v22 = vpop.f32.mrf.mxu1  ;;  %v361_v25 = vpop.f32.mrf.mxu0 }
  0xb7   :  { %v362_v60 = vadd.f32 %v1528_v31, %v361_v25  ;;  %v1569_v25 = vor.u32 %v1202_v21, %v1065_v17  ;;  %v1081_v17 = vld [vmem:[%s1879_s0 + $0xf0] sm:$0xf]  ;;  %v1206_v21 = vld [vmem:[%s1879_s0 + $0xf4] sm:$0xf0] }
  0xb9   :  { %418 = vmatmul.bf16.gmra.mxu3 %v1569_v25 }
  0xbe   :  { %v443_v29 = vpop.f32.mrf.mxu1  ;;  %v364_v30 = vpop.f32.mrf.mxu0 }
  0xbf   :  { %v444_v36 = vadd.f32 %v443_v29, %v355_v34  ;;  %v365_v26 = vadd.f32 %v1528_v31, %v364_v30  ;;  %v1051_v30 = vld [vmem:[%s1879_s0 + $0xb8] sm:$0xf0] }
  0xc1   :  { %482 = vmatmul.bf16.gmra.mxu1 %v1523_v28  ;;  %v523_v42 = vmax.f32 %v444_v36, 0.0 }
  0xc6   :  { %v445_v37 = vpop.f32.mrf.mxu1  ;;  %v366_v40 = vpop.f32.mrf.mxu0 }
  0xc7   :  { %v446_v41 = vadd.f32 %v445_v37, %v357_v35  ;;  %v367_v27 = vadd.f32 %v1528_v31, %v366_v40 }
  0xc9   :  { %v524_v43 = vmax.f32 %v446_v41, 0.0 }
  0xcb   :  { %v555_v48 = vpack.c.bf16 %v524_v43, %v523_v42  ;;  %v1197_v42 = vld [vmem:[%s1879_s0 + $0xb4] sm:$0xf] }
  0xcc   :  { %v1582_v46 = vor.u32 %v1197_v42, %v1051_v30 }
  0xcd   :  { %1159 = vmatmul.msk.bf16.vlgmr.msrb.gmra.mxu0 %vm587_vm0, %v555_v48  ;;  %v1073_v48 = vld [vmem:[%s1879_s0 + $0xe0] sm:$0xf] }
  0xce   :  { %v448_v52 = vpop.f32.mrf.mxu1  ;;  %v369_v53 = vpop.f32.mrf.mxu0 }
  0xcf   :  { %v449_v61 = vadd.f32 %v448_v52, %v360_v59  ;;  %v1204_v52 = vld [vmem:[%s1879_s0 + $0xe4] sm:$0xf0]  ;;  %v370_v55 = vadd.f32 %v1528_v31, %v369_v53  ;;  %v1059_v53 = vld [vmem:[%s1879_s0 + $0xc8] sm:$0xf0] }
  0xd0   :  { %v1590_v54 = vor.u32 %v1204_v52, %v1073_v48 }
  0xd1   :  { %487 = vmatmul.bf16.gmra.mxu1 %v1540_v49  ;;  %v525_v3 = vmax.f32 %v449_v61, 0.0 }
  0xd2   :  { %423 = vmatmul.bf16.gmra.mxu3 %v1590_v54 }
  0xd6   :  { %v450_v0 = vpop.f32.mrf.mxu1  ;;  %v371_v1 = vpop.f32.mrf.mxu0 }
  0xd7   :  { %v451_v2 = vadd.f32 %v450_v0, %v362_v60  ;;  %v372_v59 = vadd.f32 %v1528_v31, %v371_v1 }
  0xd9   :  { %v526_v7 = vmax.f32 %v451_v2, 0.0 }
  0xdb   :  { %v556_v11 = vpack.c.bf16 %v526_v7, %v525_v3 }
  0xdd   :  { %1160 = vmatmul.msk.bf16.gmra.mxu0 %vm587_vm0, %v556_v11  ;;  %v1603_v11 = vor.u32 %v1199_v8, %v1059_v53  ;;  %v1203_v53 = vld [vmem:[%s1879_s0 + $0xe4] sm:$0xf] }
  0xde   :  { %v453_v15 = vpop.f32.mrf.mxu1  ;;  %v374_v16 = vpop.f32.mrf.mxu0 }
  0xdf   :  { %v454_v29 = vadd.f32 %v453_v15, %v365_v26  ;;  %v1611_v26 = vor.u32 %v1206_v21, %v1081_v17 }
  0xe1   :  { %492 = vmatmul.bf16.gmra.mxu1 %v1561_v12  ;;  %v527_v37 = vmax.f32 %v454_v29, 0.0 }
  0xe2   :  { %428 = vmatmul.bf16.gmra.mxu3 %v1611_v26 }
  0xe6   :  { %v455_v34 = vpop.f32.mrf.mxu1  ;;  %v376_v35 = vpop.f32.mrf.mxu0 }
  0xe7   :  { %v456_v36 = vadd.f32 %v455_v34, %v367_v27  ;;  %v375_v27 = vadd.f32 %v1528_v31, %v374_v16  ;;  %v377_v29 = vadd.f32 %v1528_v31, %v376_v35  ;;  %v1067_v16 = vld [vmem:[%s1879_s0 + $0xd8] sm:$0xf0] }
  0xe9   :  { %v528_v41 = vmax.f32 %v456_v36, 0.0 }
  0xeb   :  { %v557_v43 = vpack.c.bf16 %v528_v41, %v527_v37 }
  0xed   :  { %1161 = vmatmul.msk.bf16.gmra.mxu0 %vm587_vm0, %v557_v43  ;;  %v1201_v43 = vld [vmem:[%s1879_s0 + $0xd4] sm:$0xf] }
  0xee   :  { %v458_v40 = vpop.f32.mrf.mxu1  ;;  %v379_v47 = vpop.f32.mrf.mxu0  ;;  %v1624_v48 = vor.u32 %v1201_v43, %v1067_v16  ;;  %v1083_v43 = vld [vmem:[%s1879_s0 + $0xf8] sm:$0xf0] }
  0xef   :  { %v459_v60 = vadd.f32 %v458_v40, %v370_v55  ;;  %v380_v55 = vadd.f32 %v1528_v31, %v379_v47 }
  0xf1   :  { %497 = vmatmul.bf16.gmra.mxu1 %v1582_v46  ;;  %v529_v3 = vmax.f32 %v459_v60, 0.0 }
  0xf6   :  { %v460_v61 = vpop.f32.mrf.mxu1  ;;  %v381_v0 = vpop.f32.mrf.mxu0 }
  0xf7   :  { %v461_v2 = vadd.f32 %v460_v61, %v372_v59  ;;  %v382_v59 = vadd.f32 %v1528_v31, %v381_v0 }
  0xf9   :  { %v530_v7 = vmax.f32 %v461_v2, 0.0 }
  0xfb   :  { %v558_v10 = vpack.c.bf16 %v530_v7, %v529_v3 }
  0xfd   :  { %1162 = vmatmul.msk.bf16.gmra.mxu0 %vm587_vm0, %v558_v10  ;;  %v1075_v10 = vld [vmem:[%s1879_s0 + $0xe8] sm:$0xf0] }
  0xfe   :  { %v463_v1 = vpop.f32.mrf.mxu1  ;;  %v384_v15 = vpop.f32.mrf.mxu0  ;;  %v1636_v47 = vor.u32 %v1203_v53, %v1075_v10 }
  0xff   :  { %v464_v34 = vadd.f32 %v463_v1, %v375_v27  ;;  %v385_v17 = vadd.f32 %v1528_v31, %v384_v15 }
 0x101   :  { %502 = vmatmul.bf16.gmra.mxu1 %v1603_v11  ;;  %v531_v42 = vmax.f32 %v464_v34, 0.0 }
 0x106   :  { %v465_v36 = vpop.f32.mrf.mxu1  ;;  %v386_v37 = vpop.f32.mrf.mxu0 }
 0x107   :  { %v466_v41 = vadd.f32 %v465_v36, %v377_v29  ;;  %v387_v27 = vadd.f32 %v1528_v31, %v386_v37 }
 0x109   :  { %v532_v30 = vmax.f32 %v466_v41, 0.0 }
 0x10b   :  { %v559_v40 = vpack.c.bf16 %v532_v30, %v531_v42  ;;  %v1205_v30 = vld [vmem:[%s1879_s0 + $0xf4] sm:$0xf] }
 0x10d   :  { %1163 = vmatmul.msk.bf16.gmra.mxu0 %vm587_vm0, %v559_v40  ;;  %v1648_v40 = vor.u32 %v1205_v30, %v1083_v43 }
 0x10e   :  { %v468_v35 = vpop.f32.mrf.mxu1  ;;  %v389_v52 = vpop.f32.mrf.mxu0 }
 0x10f   :  { %v469_v60 = vadd.f32 %v468_v35, %v380_v55  ;;  %v390_v35 = vadd.f32 %v1528_v31, %v389_v52 }
 0x111   :  { %507 = vmatmul.bf16.gmra.mxu1 %v1624_v48  ;;  %v533_v7 = vmax.f32 %v469_v60, 0.0 }
 0x116   :  { %v470_v61 = vpop.f32.mrf.mxu1  ;;  %v391_v3 = vpop.f32.mrf.mxu0 }
 0x117   :  { %v471_v2 = vadd.f32 %v470_v61, %v382_v59  ;;  %v392_v55 = vadd.f32 %v1528_v31, %v391_v3 }
 0x119   :  { %v534_v8 = vmax.f32 %v471_v2, 0.0 }
 0x11b   :  { %v560_v1 = vpack.c.bf16 %v534_v8, %v533_v7 }
 0x11d   :  { %1164 = vmatmul.msk.bf16.gmra.mxu0 %vm587_vm0, %v560_v1 }
 0x11e   :  { %v473_v0 = vpop.f32.mrf.mxu1  ;;  %v394_v21 = vpop.f32.mrf.mxu0 }
 0x11f   :  { %v474_v29 = vadd.f32 %v473_v0, %v385_v17  ;;  %v395_v0 = vadd.f32 %v1528_v31, %v394_v21 }
 0x121   :  { %512 = vmatmul.bf16.gmra.mxu1 %v1636_v47  ;;  %v535_v41 = vmax.f32 %v474_v29, 0.0 }
 0x126   :  { %v475_v34 = vpop.f32.mrf.mxu1  ;;  %v396_v15 = vpop.f32.mrf.mxu0 }
 0x127   :  { %v476_v36 = vadd.f32 %v475_v34, %v387_v27  ;;  %v397_v17 = vadd.f32 %v1528_v31, %v396_v15 }
 0x129   :  { %v536_v42 = vmax.f32 %v476_v36, 0.0 }
 0x12b   :  { %v561_v16 = vpack.c.bf16 %v536_v42, %v535_v41 }
 0x12d   :  { %1165 = vmatmul.msk.bf16.gmra.mxu0 %vm587_vm0, %v561_v16 }
 0x12e   :  { %v478_v37 = vpop.f32.mrf.mxu1  ;;  %v399_v61 = vpop.f32.mrf.mxu0 }
 0x12f   :  { %v479_v59 = vadd.f32 %v478_v37, %v390_v35  ;;  %v400_v30 = vadd.f32 %v1528_v31, %v399_v61  ;;  %v405_v61 = vadd.f32 %v1528_v31, %v1483_v6  ;;  %v410_v6 = vadd.f32 %v1528_v31, %v1511_v20 }
 0x131   :  { %517 = vmatmul.bf16.gmra.mxu1 %v1648_v40  ;;  %v537_v7 = vmax.f32 %v479_v59, 0.0 }
 0x136   :  { %v480_v60 = vpop.f32.mrf.mxu1  ;;  %v401_v1 = vpop.f32.mrf.mxu0 }
 0x137   :  { %v481_v2 = vadd.f32 %v480_v60, %v392_v55  ;;  %v402_v16 = vadd.f32 %v1528_v31, %v401_v1 }
 0x139   :  { %v538_v8 = vmax.f32 %v481_v2, 0.0 }
 0x13b   :  { %v562_v53 = vpack.c.bf16 %v538_v8, %v537_v7 }
 0x13d   :  { %1166 = vmatmul.msk.bf16.gmra.mxu0 %vm587_vm0, %v562_v53 }
 0x13e   :  { %v483_v10 = vpop.f32.mrf.mxu1 }
 0x13f   :  { %v484_v52 = vadd.f32 %v483_v10, %v395_v0  ;;  %v407_v10 = vadd.f32 %v1528_v31, %v1490_v9 }
 0x141   :  { %v539_v34 = vmax.f32 %v484_v52, 0.0 }
 0x146   :  { %v485_v27 = vpop.f32.mrf.mxu1 }
 0x147   :  { %v486_v29 = vadd.f32 %v485_v27, %v397_v17 }
 0x149   :  { %v540_v3 = vmax.f32 %v486_v29, 0.0 }
 0x14a   :  { %v1656_v36 = vpop.f32.mrf.mxu0 }
 0x14b   :  { %v563_v41 = vpack.c.bf16 %v540_v3, %v539_v34  ;;  %v414_v3 = vpop.f32.mrf.mxu3 }
 0x14c   :  { %v415_v20 = vadd.f32 %v1528_v31, %v414_v3 }
 0x14d   :  { %1167 = vmatmul.msk.bf16.gmra.mxu0 %vm587_vm0, %v563_v41 }
 0x14e   :  { %v488_v42 = vpop.f32.mrf.mxu1 }
 0x14f   :  { %v489_v15 = vadd.f32 %v488_v42, %v400_v30  ;;  %v412_v30 = vadd.f32 %v1528_v31, %v1515_v22 }
 0x151   :  { %v541_v55 = vmax.f32 %v489_v15, 0.0 }
 0x152   :  { %v1660_v43 = vpop.f32.mrf.mxu0 }
 0x156   :  { %v490_v37 = vpop.f32.mrf.mxu1 }
 0x157   :  { %v491_v35 = vadd.f32 %v490_v37, %v402_v16  ;;  %v416_v37 = vpop.f32.mrf.mxu3 }
 0x158   :  { %v417_v22 = vadd.f32 %v1528_v31, %v416_v37 }
 0x159   :  { %v542_v59 = vmax.f32 %v491_v35, 0.0 }
 0x15a   :  { %v1665_v60 = vpop.f32.mrf.mxu0 }
 0x15b   :  { %v564_v2 = vpack.c.bf16 %v542_v59, %v541_v55 }
 0x15d   :  { %1168 = vmatmul.msk.bf16.gmra.mxu0 %vm587_vm0, %v564_v2 }
 0x15e   :  { %v493_v7 = vpop.f32.mrf.mxu1 }
 0x15f   :  { %v494_v1 = vadd.f32 %v493_v7, %v405_v61 }
 0x161   :  { %v543_v52 = vmax.f32 %v494_v1, 0.0 }
 0x162   :  { %v1668_v8 = vpop.f32.mrf.mxu0 }
 0x166   :  { %v495_v0 = vpop.f32.mrf.mxu1 }
 0x167   :  { %v496_v17 = vadd.f32 %v495_v0, %v407_v10  ;;  %v419_v10 = vpop.f32.mrf.mxu3 }
 0x169   :  { %v544_v27 = vmax.f32 %v496_v17, 0.0 }
 0x16a   :  { %v1676_v29 = vpop.f32.mrf.mxu0 }
 0x16b   :  { %v565_v34 = vpack.c.bf16 %v544_v27, %v543_v52 }
 0x16d   :  { %1169 = vmatmul.msk.bf16.vlgmr.msra.gmra.mxu2 %vm587_vm0, %v565_v34 }
 0x16e   :  { %v498_v41 = vpop.f32.mrf.mxu1 }
 0x16f   :  { %v499_v16 = vadd.f32 %v498_v41, %v410_v6 }
 0x171   :  { %v545_v55 = vmax.f32 %v499_v16, 0.0 }
 0x172   :  { %v1679_v42 = vpop.f32.mrf.mxu0 }
 0x173   :  { %v727_v9 = vpack.c.bf16 %v1679_v42, %v1676_v29 }
 0x176   :  { %v500_v15 = vpop.f32.mrf.mxu1 }
 0x177   :  { %v501_v35 = vadd.f32 %v500_v15, %v412_v30  ;;  %v421_v30 = vpop.f32.mrf.mxu3 }
 0x179   :  { %v546_v59 = vmax.f32 %v501_v35, 0.0  ;;  %v420_v35 = vadd.f32 %v1528_v31, %v419_v10 }
 0x17a   :  { %v1687_v2 = vpop.f32.mrf.mxu0 }
 0x17b   :  { %v566_v7 = vpack.c.bf16 %v546_v59, %v545_v55  ;;  %v422_v59 = vadd.f32 %v1528_v31, %v421_v30 }
 0x17d   :  { %1170 = vmatmul.msk.bf16.gmra.mxu2 %vm587_vm0, %v566_v7 }
 0x17e   :  { %v503_v61 = vpop.f32.mrf.mxu1 }
 0x17f   :  { %v504_v17 = vadd.f32 %v503_v61, %v415_v20  ;;  %v424_v3 = vpop.f32.mrf.mxu3 }
 0x181   :  { %v547_v34 = vmax.f32 %v504_v17, 0.0 }
 0x182   :  { %v662_v1 = vpop.f32.mrf.mxu0 }
 0x183   :  { %v728_v0 = vpack.c.bf16 %v662_v1, %v1687_v2 }
 0x186   :  { %v505_v52 = vpop.f32.mrf.mxu1 }
 0x187   :  { %v506_v27 = vadd.f32 %v505_v52, %v417_v22  ;;  %v426_v17 = vpop.f32.mrf.mxu3 }
 0x188   :  { %v427_v10 = vadd.f32 %v1528_v31, %v426_v17 }
 0x189   :  { %v548_v41 = vmax.f32 %v506_v27, 0.0  ;;  %v425_v27 = vadd.f32 %v1528_v31, %v424_v3 }
 0x18a   :  { %v665_v6 = vpop.f32.mrf.mxu0 }
 0x18b   :  { %v567_v16 = vpack.c.bf16 %v548_v41, %v547_v34 }
 0x18d   :  { %1171 = vmatmul.msk.bf16.gmra.mxu2 %vm587_vm0, %v567_v16 }
 0x18e   :  { %v508_v15 = vpop.f32.mrf.mxu1 }
 0x18f   :  { %v509_v2 = vadd.f32 %v508_v15, %v420_v35  ;;  %v429_v30 = vpop.f32.mrf.mxu3 }
 0x191   :  { %v549_v61 = vmax.f32 %v509_v2, 0.0 }
 0x192   :  { %v667_v55 = vpop.f32.mrf.mxu0 }
 0x196   :  { %v510_v7 = vpop.f32.mrf.mxu1 }
 0x197   :  { %v511_v37 = vadd.f32 %v510_v7, %v422_v59 }
 0x199   :  { %v550_v20 = vmax.f32 %v511_v37, 0.0  ;;  %v430_v37 = vadd.f32 %v1528_v31, %v429_v30  ;;  %v729_v30 = vpack.c.bf16 %v667_v55, %v665_v6 }
 0x19a   :  { %v670_v1 = vpop.f32.mrf.mxu0 }
 0x19b   :  { %v568_v22 = vpack.c.bf16 %v550_v20, %v549_v61  ;;  %v431_v61 = vpop.f32.mrf.mxu3 }
 0x19c   :  { %v432_v3 = vadd.f32 %v1528_v31, %v431_v61  ;;  %v1883_v31 = vpack.c.bf16 %v1668_v8, %v1665_v60 }
 0x19d   :  { %1172 = vmatmul.msk.bf16.gmra.mxu2 %vm587_vm0, %v568_v22 }
 0x19e   :  { %v513_v52 = vpop.f32.mrf.mxu1 }
 0x19f   :  { %v514_v41 = vadd.f32 %v513_v52, %v425_v27 }
 0x1a1   :  { %v551_v15 = vmax.f32 %v514_v41, 0.0 }
 0x1a2   :  { %v672_v34 = vpop.f32.mrf.mxu0 }
 0x1a6   :  { %v515_v16 = vpop.f32.mrf.mxu1 }
 0x1a7   :  { %v516_v21 = vadd.f32 %v515_v16, %v427_v10 }
 0x1a9   :  { %v552_v35 = vmax.f32 %v516_v21, 0.0 }
 0x1aa   :  { %v675_v59 = vpop.f32.mrf.mxu0 }
 0x1ab   :  { %v569_v2 = vpack.c.bf16 %v552_v35, %v551_v15  ;;  %v730_v35 = vpack.c.bf16 %v672_v34, %v670_v1 }
 0x1ad   :  { %1173 = vmatmul.msk.bf16.gmra.mxu2 %vm587_vm0, %v569_v2 }
 0x1ae   :  { %v518_v7 = vpop.f32.mrf.mxu1 }
 0x1af   :  { %v519_v22 = vadd.f32 %v518_v7, %v430_v37 }
 0x1b1   :  { %v553_v52 = vmax.f32 %v519_v22, 0.0 }
 0x1b2   :  { %v677_v20 = vpop.f32.mrf.mxu0 }
 0x1b3   :  { %v731_v15 = vpack.c.bf16 %v677_v20, %v675_v59 }
 0x1b6   :  { %v520_v53 = vpop.f32.mrf.mxu1 }
 0x1b7   :  { %v521_v17 = vadd.f32 %v520_v53, %v432_v3  ;;  %v1884_v53 = vpack.c.bf16 %v1660_v43, %v1656_v36 }
 0x1b9   :  { %v554_v27 = vmax.f32 %v521_v17, 0.0 }
 0x1ba   :  { %v680_v10 = vpop.f32.mrf.mxu0 }
 0x1bb   :  { %v570_v16 = vpack.c.bf16 %v554_v27, %v553_v52 }
 0x1bd   :  { %1174 = vmatmul.msk.bf16.gmra.mxu2 %vm587_vm0, %v570_v16 }
 0x1c2   :  { %v682_v21 = vpop.f32.mrf.mxu0 }
 0x1c3   :  { %v732_v41 = vpack.c.bf16 %v682_v21, %v680_v10 }
 0x1c5   :  { %745 = vmatpush.bf16.msrb.mxu3 %v732_v41 }
 0x1c9   :  { %746 = vmatpush.bf16.msrb.mxu3 %v731_v15 }
 0x1ca   :  { %v685_v43 = vpop.f32.mrf.mxu0 }
 0x1cd   :  { %747 = vmatpush.bf16.msrb.mxu3 %v730_v35 }
 0x1d1   :  { %748 = vmatpush.bf16.msrb.mxu3 %v729_v30 }
 0x1d5   :  { %749 = vmatpush.bf16.msrb.mxu3 %v728_v0 }
 0x1d9   :  { %750 = vmatpush.bf16.msrb.mxu3 %v727_v9 }
 0x1dd   :  { %751 = vmatpush.bf16.msrb.mxu3 %v1883_v31 }
 0x1e1   :  { %752 = vmatpush.bf16.msrb.mxu3 %v1884_v53 }
 0x1e4   :  { %753 = vmatmul.bf16.vlgmr.msrb.gmra.mxu3 %v1316_v14 }
 0x1f0   :  { %v695_v59 = vpop.f32.mrf.mxu2 }
 0x1f4   :  { %758 = vmatmul.bf16.gmra.mxu3 %v1346_v24 }
 0x1f8   :  { %v697_v6 = vpop.f32.mrf.mxu2 }
 0x200   :  { %v700_v55 = vpop.f32.mrf.mxu2 }
 0x204   :  { %763 = vmatmul.bf16.gmra.mxu3 %v1373_v33  ;;  %v687_v33 = vpop.f32.mrf.mxu0 }
 0x208   :  { %v702_v0 = vpop.f32.mrf.mxu2 }
 0x209   :  { %v736_v7 = vpack.c.bf16 %v702_v0, %v700_v55 }
 0x20c   :  { %v690_v2 = vpop.f32.mrf.mxu0 }
 0x210   :  { %v705_v29 = vpop.f32.mrf.mxu2 }
 0x214   :  { %768 = vmatmul.bf16.gmra.mxu3 %v1391_v39  ;;  %v692_v37 = vpop.f32.mrf.mxu0 }
 0x215   :  { %v734_v61 = vpack.c.bf16 %v692_v37, %v690_v2 }
 0x218   :  { %v707_v42 = vpop.f32.mrf.mxu2 }
 0x220   :  { %v710_v60 = vpop.f32.mrf.mxu2 }
 0x224   :  { %773 = vmatmul.bf16.gmra.mxu3 %v1409_v45  ;;  %v737_v45 = vpack.c.bf16 %v707_v42, %v705_v29 }
 0x228   :  { %v712_v8 = vpop.f32.mrf.mxu2 }
 0x229   :  { %v738_v39 = vpack.c.bf16 %v712_v8, %v710_v60 }
 0x230   :  { %v715_v36 = vpop.f32.mrf.mxu2 }
 0x234   :  { %778 = vmatmul.bf16.gmra.mxu3 %v1427_v51  ;;  %v735_v51 = vpack.c.bf16 %v697_v6, %v695_v59 }
 0x238   :  { %v717_v14 = vpop.f32.mrf.mxu2 }
 0x239   :  { %v739_v34 = vpack.c.bf16 %v717_v14, %v715_v36 }
 0x240   :  { %v720_v9 = vpop.f32.mrf.mxu2 }
 0x244   :  { %783 = vmatmul.bf16.gmra.mxu3 %v1445_v57  ;;  %v733_v57 = vpack.c.bf16 %v687_v33, %v685_v43 }
 0x248   :  { %v722_v24 = vpop.f32.mrf.mxu2 }
 0x249   :  { %v740_v1 = vpack.c.bf16 %v722_v24, %v720_v9 }
 0x24b   :  { %834 = vmatpush.bf16.msrb.mxu2 %v740_v1 }
 0x24f   :  { %835 = vmatpush.bf16.msrb.mxu2 %v739_v34 }
 0x253   :  { %836 = vmatpush.bf16.msrb.mxu2 %v738_v39 }
 0x254   :  { %788 = vmatmul.bf16.gmra.mxu3 %v1463_v63 }
 0x257   :  { %837 = vmatpush.bf16.msrb.mxu2 %v737_v45 }
 0x25b   :  { %838 = vmatpush.bf16.msrb.mxu2 %v736_v7 }
 0x25f   :  { %839 = vmatpush.bf16.msrb.mxu2 %v735_v51 }
 0x263   :  { %840 = vmatpush.bf16.msrb.mxu2 %v734_v61 }
 0x264   :  { %793 = vmatmul.bf16.gmra.mxu3 %v1481_v5 }
 0x267   :  { %841 = vmatpush.bf16.msrb.mxu2 %v733_v57  ;;  %v754_v63 = vpop.f32.mrf.mxu3 }
 0x26a   :  { %842 = vmatmul.bf16.vlgmr.msrb.gmra.mxu2 %v1371_v32 }
 0x26f   :  { %v756_v32 = vpop.f32.mrf.mxu3 }
 0x274   :  { %798 = vmatmul.bf16.gmra.mxu3 %v1509_v19 }
 0x277   :  { %v759_v5 = vpop.f32.mrf.mxu3 }
 0x27a   :  { %847 = vmatmul.bf16.gmra.mxu2 %v1389_v38 }
 0x284   :  { %803 = vmatmul.bf16.gmra.mxu3 %v1314_v13  ;;  %v761_v13 = vpop.f32.mrf.mxu3 }
 0x28a   :  { %852 = vmatmul.bf16.gmra.mxu2 %v1407_v44 }
 0x28c   :  { %v764_v38 = vpop.f32.mrf.mxu3 }
 0x294   :  { %808 = vmatmul.bf16.gmra.mxu3 %v1344_v23  ;;  %v1737_v23 = vld [vmem:[%s1881_s4] ss:$0 sm:$0xff] }
 0x295   :  { %v755_v44 = vadd.f32 %v1737_v23, %v754_v63  ;;  %v762_v22 = vadd.f32 %v1737_v23, %v761_v13 }
 0x29a   :  { %857 = vmatmul.bf16.gmra.mxu2 %v1425_v50  ;;  %v766_v50 = vpop.f32.mrf.mxu3 }
 0x29b   :  { %v767_v21 = vadd.f32 %v1737_v23, %v766_v50 }
 0x2a4   :  { %813 = vmatmul.bf16.gmra.mxu3 %v1548_v58 }
 0x2aa   :  { %862 = vmatmul.bf16.gmra.mxu2 %v1443_v56 }
 0x2b4   :  { %818 = vmatmul.bf16.gmra.mxu3 %v1569_v25 }
 0x2ba   :  { %867 = vmatmul.bf16.gmra.mxu2 %v1461_v62 }
 0x2c4   :  { %823 = vmatmul.bf16.gmra.mxu3 %v1590_v54 }
 0x2ca   :  { %872 = vmatmul.bf16.gmra.mxu2 %v1479_v4  ;;  %v769_v4 = vpop.f32.mrf.mxu3 }
 0x2d2   :  { %v771_v25 = vpop.f32.mrf.mxu3 }
 0x2d3   :  { %v772_v59 = vadd.f32 %v1737_v23, %v771_v25 }
 0x2d4   :  { %828 = vmatmul.bf16.gmra.mxu3 %v1611_v26 }
 0x2da   :  { %877 = vmatmul.bf16.gmra.mxu2 %v1507_v18  ;;  %v757_v18 = vadd.f32 %v1737_v23, %v756_v32  ;;  %v774_v3 = vpop.f32.mrf.mxu3 }
 0x2e2   :  { %v776_v26 = vpop.f32.mrf.mxu3 }
 0x2e3   :  { %v777_v60 = vadd.f32 %v1737_v23, %v776_v26 }
 0x2ea   :  { %882 = vmatmul.bf16.gmra.mxu2 %v1523_v28  ;;  %v760_v28 = vadd.f32 %v1737_v23, %v759_v5  ;;  %v779_v16 = vpop.f32.mrf.mxu3 }
 0x2ed   :  { %v843_v56 = vpop.f32.mrf.mxu2 }
 0x2ee   :  { %v844_v62 = vadd.f32 %v843_v56, %v755_v44 }
 0x2f0   :  { %923 = vst [vmem:[%s1882_s5] sm:$0xff] %v844_v62 }
 0x2f2   :  { %v781_v35 = vpop.f32.mrf.mxu3 }
 0x2f3   :  { %v782_v1 = vadd.f32 %v1737_v23, %v781_v35 }
 0x2f5   :  { %v845_v19 = vpop.f32.mrf.mxu2 }
 0x2f6   :  { %v846_v58 = vadd.f32 %v845_v19, %v757_v18 }
 0x2f8   :  { %924 = vst [vmem:[%s1882_s5 + $0x8] sm:$0xff] %v846_v58 }
 0x2fa   :  { %887 = vmatmul.bf16.gmra.mxu2 %v1540_v49  ;;  %v765_v49 = vadd.f32 %v1737_v23, %v764_v38  ;;  %v784_v53 = vpop.f32.mrf.mxu3 }
 0x2fd   :  { %v848_v54 = vpop.f32.mrf.mxu2 }
 0x2fe   :  { %v849_v20 = vadd.f32 %v848_v54, %v760_v28 }
 0x300   :  { %925 = vst [vmem:[%s1882_s5 + $0x10] sm:$0xff] %v849_v20 }
 0x302   :  { %v786_v29 = vpop.f32.mrf.mxu3 }
 0x303   :  { %v787_v7 = vadd.f32 %v1737_v23, %v786_v29 }
 0x305   :  { %v850_v17 = vpop.f32.mrf.mxu2 }
 0x306   :  { %v851_v52 = vadd.f32 %v850_v17, %v762_v22 }
 0x308   :  { %926 = vst [vmem:[%s1882_s5 + $0x18] sm:$0xff] %v851_v52 }
 0x30a   :  { %892 = vmatmul.bf16.gmra.mxu2 %v1561_v12  ;;  %v770_v12 = vadd.f32 %v1737_v23, %v769_v4  ;;  %v789_v14 = vpop.f32.mrf.mxu3 }
 0x30d   :  { %v853_v27 = vpop.f32.mrf.mxu2 }
 0x30e   :  { %v854_v10 = vadd.f32 %v853_v27, %v765_v49 }
 0x310   :  { %927 = vst [vmem:[%s1882_s5 + $0x20] sm:$0xff] %v854_v10 }
 0x312   :  { %v791_v24 = vpop.f32.mrf.mxu3 }
 0x313   :  { %v792_v5 = vadd.f32 %v1737_v23, %v791_v24 }
 0x315   :  { %v855_v41 = vpop.f32.mrf.mxu2 }
 0x316   :  { %v856_v15 = vadd.f32 %v855_v41, %v767_v21 }
 0x318   :  { %928 = vst [vmem:[%s1882_s5 + $0x28] sm:$0xff] %v856_v15 }
 0x31a   :  { %897 = vmatmul.bf16.gmra.mxu2 %v1582_v46  ;;  %v775_v46 = vadd.f32 %v1737_v23, %v774_v3  ;;  %v794_v39 = vpop.f32.mrf.mxu3 }
 0x31d   :  { %v858_v30 = vpop.f32.mrf.mxu2 }
 0x31e   :  { %v859_v31 = vadd.f32 %v858_v30, %v770_v12 }
 0x320   :  { %929 = vst [vmem:[%s1882_s5 + $0x30] sm:$0xff] %v859_v31 }
 0x322   :  { %v796_v37 = vpop.f32.mrf.mxu3 }
 0x323   :  { %v797_v4 = vadd.f32 %v1737_v23, %v796_v37 }
 0x325   :  { %v860_v6 = vpop.f32.mrf.mxu2 }
 0x326   :  { %v861_v55 = vadd.f32 %v860_v6, %v772_v59 }
 0x328   :  { %930 = vst [vmem:[%s1882_s5 + $0x38] sm:$0xff] %v861_v55 }
 0x32a   :  { %902 = vmatmul.bf16.gmra.mxu2 %v1603_v11  ;;  %v780_v11 = vadd.f32 %v1737_v23, %v779_v16  ;;  %v799_v32 = vpop.f32.mrf.mxu3 }
 0x32b   :  { %v800_v58 = vadd.f32 %v1737_v23, %v799_v32 }
 0x32d   :  { %v863_v0 = vpop.f32.mrf.mxu2 }
 0x32e   :  { %v864_v42 = vadd.f32 %v863_v0, %v775_v46 }
 0x330   :  { %931 = vst [vmem:[%s1882_s5 + $0x40] sm:$0xff] %v864_v42 }
 0x332   :  { %v801_v44 = vpop.f32.mrf.mxu3 }
 0x333   :  { %v802_v20 = vadd.f32 %v1737_v23, %v801_v44 }
 0x335   :  { %v865_v8 = vpop.f32.mrf.mxu2 }
 0x336   :  { %v866_v36 = vadd.f32 %v865_v8, %v777_v60 }
 0x338   :  { %932 = vst [vmem:[%s1882_s5 + $0x48] sm:$0xff] %v866_v36 }
 0x33a   :  { %907 = vmatmul.bf16.gmra.mxu2 %v1624_v48  ;;  %v785_v48 = vadd.f32 %v1737_v23, %v784_v53  ;;  %v804_v62 = vpop.f32.mrf.mxu3 }
 0x33b   :  { %v805_v52 = vadd.f32 %v1737_v23, %v804_v62 }
 0x33d   :  { %v868_v43 = vpop.f32.mrf.mxu2 }
 0x33e   :  { %v869_v9 = vadd.f32 %v868_v43, %v780_v11 }
 0x340   :  { %933 = vst [vmem:[%s1882_s5 + $0x50] sm:$0xff] %v869_v9 }
 0x342   :  { %v806_v25 = vpop.f32.mrf.mxu3 }
 0x343   :  { %v807_v10 = vadd.f32 %v1737_v23, %v806_v25 }
 0x345   :  { %v870_v33 = vpop.f32.mrf.mxu2 }
 0x346   :  { %v871_v34 = vadd.f32 %v870_v33, %v782_v1 }
 0x348   :  { %934 = vst [vmem:[%s1882_s5 + $0x58] sm:$0xff] %v871_v34 }
 0x34a   :  { %912 = vmatmul.bf16.gmra.mxu2 %v1636_v47  ;;  %v790_v47 = vadd.f32 %v1737_v23, %v789_v14  ;;  %v809_v17 = vpop.f32.mrf.mxu3 }
 0x34b   :  { %v810_v41 = vadd.f32 %v1737_v23, %v809_v17 }
 0x34d   :  { %v873_v2 = vpop.f32.mrf.mxu2 }
 0x34e   :  { %v874_v45 = vadd.f32 %v873_v2, %v785_v48 }
 0x350   :  { %935 = vst [vmem:[%s1882_s5 + $0x60] sm:$0xff] %v874_v45 }
 0x352   :  { %v811_v27 = vpop.f32.mrf.mxu3 }
 0x353   :  { %v812_v30 = vadd.f32 %v1737_v23, %v811_v27 }
 0x355   :  { %v875_v51 = vpop.f32.mrf.mxu2 }
 0x356   :  { %v876_v61 = vadd.f32 %v875_v51, %v787_v7 }
 0x358   :  { %936 = vst [vmem:[%s1882_s5 + $0x68] sm:$0xff] %v876_v61 }
 0x35a   :  { %917 = vmatmul.bf16.gmra.mxu2 %v1648_v40  ;;  %v795_v40 = vadd.f32 %v1737_v23, %v794_v39  ;;  %v814_v15 = vpop.f32.mrf.mxu3 }
 0x35b   :  { %v815_v6 = vadd.f32 %v1737_v23, %v814_v15 }
 0x35d   :  { %v878_v57 = vpop.f32.mrf.mxu2 }
 0x35e   :  { %v879_v63 = vadd.f32 %v878_v57, %v790_v47 }
 0x360   :  { %937 = vst [vmem:[%s1882_s5 + $0x70] sm:$0xff] %v879_v63 }
 0x362   :  { %v816_v53 = vpop.f32.mrf.mxu3 }
 0x363   :  { %v817_v29 = vadd.f32 %v1737_v23, %v816_v53 }
 0x365   :  { %v880_v13 = vpop.f32.mrf.mxu2 }
 0x366   :  { %v881_v38 = vadd.f32 %v880_v13, %v792_v5 }
 0x368   :  { %938 = vst [vmem:[%s1882_s5 + $0x78] sm:$0xff] %v881_v38 }
 0x36a   :  { %v819_v0 = vpop.f32.mrf.mxu3 }
 0x36b   :  { %v820_v36 = vadd.f32 %v1737_v23, %v819_v0 }
 0x36d   :  { %v883_v50 = vpop.f32.mrf.mxu2 }
 0x36e   :  { %v884_v56 = vadd.f32 %v883_v50, %v795_v40 }
 0x370   :  { %939 = vst [vmem:[%s1882_s5 + $0x80] sm:$0xff] %v884_v56 }
 0x372   :  { %v821_v8 = vpop.f32.mrf.mxu3 }
 0x373   :  { %v822_v9 = vadd.f32 %v1737_v23, %v821_v8 }
 0x375   :  { %v885_v18 = vpop.f32.mrf.mxu2 }
 0x376   :  { %v886_v19 = vadd.f32 %v885_v18, %v797_v4 }
 0x378   :  { %940 = vst [vmem:[%s1882_s5 + $0x88] sm:$0xff] %v886_v19 }
 0x37a   :  { %v824_v43 = vpop.f32.mrf.mxu3 }
 0x37b   :  { %v825_v33 = vadd.f32 %v1737_v23, %v824_v43 }
 0x37d   :  { %v888_v28 = vpop.f32.mrf.mxu2 }
 0x37e   :  { %v889_v54 = vadd.f32 %v888_v28, %v800_v58 }
 0x380   :  { %941 = vst [vmem:[%s1882_s5 + $0x90] sm:$0xff] %v889_v54 }
 0x382   :  { %v826_v48 = vpop.f32.mrf.mxu3 }
 0x383   :  { %v827_v2 = vadd.f32 %v1737_v23, %v826_v48 }
 0x385   :  { %v890_v3 = vpop.f32.mrf.mxu2 }
 0x386   :  { %v891_v22 = vadd.f32 %v890_v3, %v802_v20 }
 0x388   :  { %942 = vst [vmem:[%s1882_s5 + $0x98] sm:$0xff] %v891_v22 }
 0x38a   :  { %v829_v51 = vpop.f32.mrf.mxu3 }
 0x38b   :  { %v830_v37 = vadd.f32 %v1737_v23, %v829_v51 }
 0x38d   :  { %v893_v49 = vpop.f32.mrf.mxu2 }
 0x38e   :  { %v894_v26 = vadd.f32 %v893_v49, %v805_v52 }
 0x390   :  { %943 = vst [vmem:[%s1882_s5 + $0xa0] sm:$0xff] %v894_v26 }
 0x392   :  { %v831_v57 = vpop.f32.mrf.mxu3 }
 0x393   :  { %v832_v63 = vadd.f32 %v1737_v23, %v831_v57 }
 0x395   :  { %v895_v16 = vpop.f32.mrf.mxu2 }
 0x396   :  { %v896_v21 = vadd.f32 %v895_v16, %v807_v10 }
 0x398   :  { %944 = vst [vmem:[%s1882_s5 + $0xa8] sm:$0xff] %v896_v21 }
 0x39d   :  { %v898_v12 = vpop.f32.mrf.mxu2 }
 0x39e   :  { %v899_v35 = vadd.f32 %v898_v12, %v810_v41 }
 0x3a0   :  { %945 = vst [vmem:[%s1882_s5 + $0xb0] sm:$0xff] %v899_v35 }
 0x3a5   :  { %v900_v31 = vpop.f32.mrf.mxu2 }
 0x3a6   :  { %v901_v59 = vadd.f32 %v900_v31, %v812_v30 }
 0x3a8   :  { %946 = vst [vmem:[%s1882_s5 + $0xb8] sm:$0xff] %v901_v59 }
 0x3ad   :  { %v903_v55 = vpop.f32.mrf.mxu2 }
 0x3ae   :  { %v904_v46 = vadd.f32 %v903_v55, %v815_v6 }
 0x3b0   :  { %947 = vst [vmem:[%s1882_s5 + $0xc0] sm:$0xff] %v904_v46 }
 0x3b5   :  { %v905_v42 = vpop.f32.mrf.mxu2 }
 0x3b6   :  { %v906_v60 = vadd.f32 %v905_v42, %v817_v29 }
 0x3b8   :  { %948 = vst [vmem:[%s1882_s5 + $0xc8] sm:$0xff] %v906_v60 }
 0x3bd   :  { %v908_v14 = vpop.f32.mrf.mxu2 }
 0x3be   :  { %v909_v11 = vadd.f32 %v908_v14, %v820_v36 }
 0x3c0   :  { %949 = vst [vmem:[%s1882_s5 + $0xd0] sm:$0xff] %v909_v11 }
 0x3c5   :  { %v910_v24 = vpop.f32.mrf.mxu2 }
 0x3c6   :  { %v911_v1 = vadd.f32 %v910_v24, %v822_v9 }
 0x3c8   :  { %950 = vst [vmem:[%s1882_s5 + $0xd8] sm:$0xff] %v911_v1 }
 0x3cd   :  { %v913_v34 = vpop.f32.mrf.mxu2 }
 0x3ce   :  { %v914_v39 = vadd.f32 %v913_v34, %v825_v33 }
 0x3d0   :  { %951 = vst [vmem:[%s1882_s5 + $0xe0] sm:$0xff] %v914_v39 }
 0x3d5   :  { %v915_v45 = vpop.f32.mrf.mxu2 }
 0x3d6   :  { %v916_v7 = vadd.f32 %v915_v45, %v827_v2 }
 0x3d8   :  { %952 = vst [vmem:[%s1882_s5 + $0xe8] sm:$0xff] %v916_v7 }
 0x3dd   :  { %v918_v61 = vpop.f32.mrf.mxu2 }
 0x3de   :  { %v919_v47 = vadd.f32 %v918_v61, %v830_v37 }
 0x3e0   :  { %953 = vst [vmem:[%s1882_s5 + $0xf0] sm:$0xff] %v919_v47 }
 0x3e5   :  { %v920_v32 = vpop.f32.mrf.mxu2 }
 0x3e6   :  { %v921_v5 = vadd.f32 %v920_v32, %v832_v63 }
 0x3e8   :  { %954 = vst [vmem:[%s1882_s5 + $0xf8] sm:$0xff] %v921_v5 }

</bundles_post_ra>
